<compile_context>
chip_gen: v7x
topology: tpu7x:2x2x1
jax: 0.10.0
libtpu: 0.0.40
codegen_flags: <defaults>
</compile_context>

<pallas_src>
import functools
import jax
import jax.numpy as jnp
from jax.experimental import pallas as pl
from jax.experimental.pallas import tpu as pltpu

LAMBDA_MSE = 1.0
LAMBDA_PERCEPTUAL = 0.1
_VMEM_LIMIT = 32 * 1024 * 1024  # safe on v5e/v6e/v7x (<= physical everywhere)


def _round_up(x, m):
    return ((x + m - 1) // m) * m


# ----------------------------------------------------------------------------
# Pallas kernels
# ----------------------------------------------------------------------------
def _linear_kernel(x_ref, w_ref, b_ref, o_ref, *, activation):
    # bf16 MXU operands (pre-cast at init), f32 accumulation; bias/GELU in f32
    # (v5e has no bf16 VPU/EUP), tanh GELU = 1 EUP op.
    acc = jnp.dot(x_ref[...], w_ref[...], preferred_element_type=jnp.float32)
    acc = acc + b_ref[...]
    if activation == "gelu":
        # TODO(synk): tanh-approx GELU vs PyTorch nn.GELU's exact erf (tiny
        # numeric mismatch; irrelevant for the synthetic backbone).
        acc = jax.nn.gelu(acc)
    o_ref[...] = acc.astype(o_ref.dtype)


def pallas_linear(x, w, b, activation="none", tm=256):
    """out = act(x @ w + b); x:[M,K] bf16, w:[K,N] bf16, b:[N] f32. Tiled over M."""
    M, K = x.shape
    K2, N = w.shape
    assert K == K2
    tm_eff = min(tm, M)
    if tm_eff < M:
        tm_eff = max(8, (tm_eff // 8) * 8)   # sublane-aligned partial blocks
    grid_m = pl.cdiv(M, tm_eff)
    kernel = functools.partial(_linear_kernel, activation=activation)
    # TODO(synk): N=64 first-merge output is still a masked (<128-lane) store;
    # a lane-dense [tm/2, 2N] slab store is a further optimization.
    return pl.pallas_call(
        kernel,
        out_shape=jax.ShapeDtypeStruct((M, N), jnp.bfloat16),
        grid=(grid_m,),
        in_specs=[
            pl.BlockSpec((tm_eff, K), lambda i: (i, 0)),
            pl.BlockSpec((K, N), lambda i: (0, 0)),
            pl.BlockSpec((1, N), lambda i: (0, 0)),
        ],
        out_specs=pl.BlockSpec((tm_eff, N), lambda i: (i, 0)),
        compiler_params=pltpu.CompilerParams(
            dimension_semantics=("parallel",),
            vmem_limit_bytes=_VMEM_LIMIT),
    )(x, w, b.reshape(1, N))


def _patch_block0_kernel(x_ref, w1_ref, b1_ref, w2_ref, b2_ref, o_ref):
    # Fused: (x @ W_patch + b) @ W_block0 + b, GELU.  The lane-sparse [TM,32]
    # intermediate lives only in VMEM/registers, never round-trips HBM.
    h = jnp.dot(x_ref[...], w1_ref[...], preferred_element_type=jnp.float32)
    h = h + b1_ref[...]
    h = jnp.dot(h.astype(jnp.bfloat16), w2_ref[...],
                preferred_element_type=jnp.float32)
    h = h + b2_ref[...]
    o_ref[...] = jax.nn.gelu(h).astype(o_ref.dtype)


def pallas_patch_block0(x, w1, b1, w2, b2, tm=128):
    # tm=128 keeps >=2 grid steps at small M so both v7x TensorCores work.
    M, K = x.shape
    C0 = w1.shape[1]
    tm_eff = min(tm, M)
    if tm_eff < M:
        tm_eff = max(8, (tm_eff // 8) * 8)
    grid_m = pl.cdiv(M, tm_eff)
    return pl.pallas_call(
        _patch_block0_kernel,
        out_shape=jax.ShapeDtypeStruct((M, C0), jnp.bfloat16),
        grid=(grid_m,),
        in_specs=[
            # K=147 is the full array dim -> legal block, no HBM pad copy.
            pl.BlockSpec((tm_eff, K), lambda i: (i, 0)),
            pl.BlockSpec((K, C0), lambda i: (0, 0)),
            pl.BlockSpec((1, C0), lambda i: (0, 0)),
            pl.BlockSpec((C0, C0), lambda i: (0, 0)),
            pl.BlockSpec((1, C0), lambda i: (0, 0)),
        ],
        out_specs=pl.BlockSpec((tm_eff, C0), lambda i: (i, 0)),
        compiler_params=pltpu.CompilerParams(
            dimension_semantics=("parallel",),
            vmem_limit_bytes=_VMEM_LIMIT),
    )(x, w1, b1.reshape(1, C0), w2, b2.reshape(1, C0))


def _pair_reduce_kernel(a_ref, b_ref, o_ref, *, op, rows_total, tr, need_mask):
    i = pl.program_id(1)

    @pl.when(i == 0)
    def _():
        o_ref[...] = jnp.zeros_like(o_ref)

    d = a_ref[...].astype(jnp.float32) - b_ref[...].astype(jnp.float32)
    v = d * d if op == "sq" else jnp.abs(d)
    if need_mask:
        # Ragged grid tail: zero rows that lie past the real array.
        start = (pl.program_id(0) * pl.num_programs(1) + i) * tr
        ridx = jax.lax.broadcasted_iota(jnp.int32, v.shape, 0) + start
        v = jnp.where(ridx < rows_total, v, 0.0)
    # Sublane-grouped partial sum: pure VALU vreg adds (no per-step XLU
    # cross-lane reduce); the (8,128) accumulator lives in the resident
    # output block. Final cross-lane reduce happens outside the kernel.
    o_ref[...] = o_ref[...] + v.reshape(tr // 8, 8, 128).sum(axis=0)


def pallas_pair_sum(a, b, op, tr=1024):
    """sum((a-b)^2) or sum(|a-b|) as a tiled, pipelined grid reduction.

    Inputs streamed in native dtype as lane-dense [tr,128] blocks; at most a
    <=1023-element zero pad (identical on both inputs -> contributes 0) is
    added so the flat array reshapes to [rows,128] with rows % 8 == 0.
    A leading "parallel" grid axis splits the reduction across TensorCores
    when there are enough row-blocks; per-core (8,128) partials are summed
    outside the kernel.
    """
    af = a.reshape(-1)
    bf = b.reshape(-1)
    n = af.shape[0]
    pad_n = _round_up(n, 8 * 128)
    if pad_n != n:
        af = jnp.pad(af, (0, pad_n - n))
        bf = jnp.pad(bf, (0, pad_n - n))
    rows = pad_n // 128
    af = af.reshape(rows, 128)
    bf = bf.reshape(rows, 128)

    tr_eff = min(tr, rows)                 # both multiples of 8
    row_blocks = pl.cdiv(rows, tr_eff)
    if row_blocks >= 2 and row_blocks % 2 == 0:
        ncore, inner = 2, row_blocks // 2  # v7x: one half per TensorCore
    else:
        ncore, inner = 1, row_blocks
    need_mask = (ncore * inner * tr_eff) != rows

    kernel = functools.partial(_pair_reduce_kernel, op=op, rows_total=rows,
                               tr=tr_eff, need_mask=need_mask)
    out = pl.pallas_call(
        kernel,
        out_shape=jax.ShapeDtypeStruct((ncore * 8, 128), jnp.float32),
        grid=(ncore, inner),
        in_specs=[
            pl.BlockSpec((tr_eff, 128), lambda c, i: (c * inner + i, 0)),
            pl.BlockSpec((tr_eff, 128), lambda c, i: (c * inner + i, 0)),
        ],
        out_specs=pl.BlockSpec((8, 128), lambda c, i: (c, 0)),
        compiler_params=pltpu.CompilerParams(
            dimension_semantics=("parallel", "arbitrary"),
            vmem_limit_bytes=_VMEM_LIMIT),
    )(af, bf)
    return jnp.sum(out)


# ----------------------------------------------------------------------------
# Synthetic Hiera feature extractor (deterministic weights)
# ----------------------------------------------------------------------------
# TODO(synk): the pretrained hiera_base_224 backbone (mask-unit attention
# blocks, ImageNet checkpoint) is replaced by a deterministic stand-in:
# patch-embed conv (as im2col + fused Pallas matmuls) followed by per-stage
# 2x2 patch-merge projections with GELU, reproducing Hiera's stage-wise
# intermediate resolutions / channel doubling, but not its attention layers.
def init_hiera_params(key, in_chans=3, embed_dim=32, num_stages=4, patch_kernel=7):
    keys = jax.random.split(key, 1 + num_stages)
    k_raw = patch_kernel * patch_kernel * in_chans           # 147, unpadded
    params = {
        "patch_w": (0.02 * jax.random.normal(
            keys[0], (k_raw, embed_dim), jnp.float32)).astype(jnp.bfloat16),
        "patch_b": jnp.zeros((embed_dim,), jnp.float32),
        "block0_w": (0.02 * jax.random.normal(
            keys[1], (embed_dim, embed_dim), jnp.float32)).astype(jnp.bfloat16),
        "block0_b": jnp.zeros((embed_dim,), jnp.float32),
        "merges": [],
    }
    c = embed_dim
    for s in range(1, num_stages):
        w = (0.02 * jax.random.normal(
            keys[1 + s], (4 * c, 2 * c), jnp.float32)).astype(jnp.bfloat16)
        b = jnp.zeros((2 * c,), jnp.float32)
        params["merges"].append((w, b))
        c = 2 * c
    return params


def hiera_features(x_nchw, params, patch_kernel=7, patch_stride=4, patch_pad=3):
    # NCHW -> NHWC in bf16, then im2col via a single depthwise identity conv
    # (no 49-slice stack, patches buffer written once, already in bf16).
    x = jnp.transpose(x_nchw, (0, 2, 3, 1)).astype(jnp.bfloat16)
    patches = jax.lax.conv_general_dilated_patches(
        x, filter_shape=(patch_kernel, patch_kernel),
        window_strides=(patch_stride, patch_stride),
        padding=((patch_pad, patch_pad), (patch_pad, patch_pad)),
        dimension_numbers=("NHWC", "HWIO", "NHWC"))
    Bt, Ho, Wo, K = patches.shape
    cols = patches.reshape(Bt * Ho * Wo, K)                   # K = 147, unpadded

    x = pallas_patch_block0(cols, params["patch_w"], params["patch_b"],
                            params["block0_w"], params["block0_b"])
    C0 = x.shape[-1]
    x = x.reshape(Bt, Ho, Wo, C0)
    intermediates = [x]
    for (w, b) in params["merges"]:
        # TODO(synk): 2x2 patch-merge gather stays as an XLA reshape/transpose
        # (bf16 now) between kernels; fusing all merge stages into one
        # pallas_call with VMEM-resident intermediates is a further win at
        # small resolutions.
        Bc, h, wd, C = x.shape
        xm = x.reshape(Bc, h // 2, 2, wd // 2, 2, C)
        xm = jnp.transpose(xm, (0, 1, 3, 2, 4, 5)).reshape(
            Bc * (h // 2) * (wd // 2), 4 * C)
        x = pallas_linear(xm, w, b, activation="gelu").reshape(
            Bc, h // 2, wd // 2, 2 * C)
        intermediates.append(x)
    return intermediates


# ----------------------------------------------------------------------------
# Jitted functional forward + module-equivalent wrapper
# ----------------------------------------------------------------------------
def _forward_impl(params, sr_image, hr_image, selected_layers):
    B = sr_image.shape[0]
    # sr and hr share backbone weights -> run them together (one launch per
    # layer, each weight DMA'd into VMEM once, 2x M per matmul).
    both = jnp.concatenate([sr_image, hr_image], axis=0)
    feats = hiera_features(both, params)
    pairs = [(feats[i][:B], feats[i][B:])
             for i in selected_layers if i < len(feats)]

    mse = pallas_pair_sum(sr_image, hr_image, op="sq") / float(sr_image.size)
    if pairs:
        l1s = [pallas_pair_sum(s, h, op="abs") / float(s.size) for s, h in pairs]
        perc = sum(l1s) / float(len(l1s))
    else:
        perc = jnp.float32(0.0)
    total = LAMBDA_MSE * mse + LAMBDA_PERCEPTUAL * perc
    return total, mse, perc


class HieraNoFreqPercepPallas:
    def __init__(self, layers=(1,), alpha=0.5, key=jax.random.PRNGKey(42)):
        self.alpha = alpha  # only used by the (dead) FFT path in the reference
        self.selected_layers = tuple(int(l) for l in layers)
        self.params = init_hiera_params(key)
        self._forward = jax.jit(_forward_impl,
                                static_argnames=("selected_layers",))

    def __call__(self, sr_image, hr_image):
        total, mse, perc = self._forward(
            self.params, sr_image, hr_image,
            selected_layers=self.selected_layers)
        # Host print once, after the single jitted graph has been dispatched
        # (no mid-graph device sync).
        print(f"MSE Loss: {float(mse)}, Perceptual Loss: {float(perc)}")
        return total


if __name__ == "__main__":
    key = jax.random.PRNGKey(0)
    k1, k2 = jax.random.split(key)
    B, C, H, W = 2, 3, 32, 32
    sr_image = jax.random.normal(k1, (B, C, H, W), jnp.float32)
    hr_image = jax.random.normal(k2, (B, C, H, W), jnp.float32)

    model = HieraNoFreqPercepPallas(layers=[1])
    total = model(sr_image, hr_image)
    total = jax.block_until_ready(total)
    assert bool(jnp.isfinite(total)), "loss is not finite"
    print("KERNEL_OK")
</pallas_src>

<mosaic_0001>
module attributes {stable_mosaic.version = 11 : i64} {
  func.func @_patch_block0_kernel(%arg0: i32, %arg1: memref<128x147xbf16, #tpu.memory_space<vmem>>, %arg2: memref<147x32xbf16, #tpu.memory_space<vmem>>, %arg3: memref<1x32xf32, #tpu.memory_space<vmem>>, %arg4: memref<32x32xbf16, #tpu.memory_space<vmem>>, %arg5: memref<1x32xf32, #tpu.memory_space<vmem>>, %arg6: memref<128x32xbf16, #tpu.memory_space<vmem>>) attributes {dimension_semantics = [#tpu.dimension_semantics<parallel>], iteration_bounds = array<i64: 2>, scalar_prefetch = 0 : i64, scratch_operands = 0 : i64, tpu.core_type = #tpu.core_type<tc>, window_params = [{transform_indices = @transform_0, window_bounds = array<i64: 128, 147>}, {pipeline_mode = #tpu.pipeline_mode<synchronous>, transform_indices = @transform_1, window_bounds = array<i64: 147, 32>}, {pipeline_mode = #tpu.pipeline_mode<synchronous>, transform_indices = @transform_2, window_bounds = array<i64: 1, 32>}, {pipeline_mode = #tpu.pipeline_mode<synchronous>, transform_indices = @transform_3, window_bounds = array<i64: 32, 32>}, {pipeline_mode = #tpu.pipeline_mode<synchronous>, transform_indices = @transform_4, window_bounds = array<i64: 1, 32>}, {transform_indices = @transform_5, window_bounds = array<i64: 128, 32>}]} {
    %c0 = arith.constant 0 : index
    %c0_0 = arith.constant 0 : index
    %0 = vector.load %arg1[%c0, %c0_0] : memref<128x147xbf16, #tpu.memory_space<vmem>>, vector<128x147xbf16>
    %c0_1 = arith.constant 0 : index
    %c0_2 = arith.constant 0 : index
    %1 = vector.load %arg2[%c0_1, %c0_2] : memref<147x32xbf16, #tpu.memory_space<vmem>>, vector<147x32xbf16>
    %cst = arith.constant dense<0.000000e+00> : vector<128x32xf32>
    %2 = tpu.matmul %0, %1, %cst {dimension_numbers = #tpu.dot_dimension_numbers<[1], [0], [0], [1], [0, 0, 1, 1], [], []>} : vector<128x147xbf16>, vector<147x32xbf16>, vector<128x32xf32> -> vector<128x32xf32>
    %c0_3 = arith.constant 0 : index
    %c0_4 = arith.constant 0 : index
    %3 = vector.load %arg3[%c0_3, %c0_4] : memref<1x32xf32, #tpu.memory_space<vmem>>, vector<1x32xf32>
    %4 = vector.broadcast %3 : vector<1x32xf32> to vector<128x32xf32>
    %5 = arith.addf %2, %4 : vector<128x32xf32>
    %6 = arith.truncf %5 : vector<128x32xf32> to vector<128x32xbf16>
    %c0_5 = arith.constant 0 : index
    %c0_6 = arith.constant 0 : index
    %7 = vector.load %arg4[%c0_5, %c0_6] : memref<32x32xbf16, #tpu.memory_space<vmem>>, vector<32x32xbf16>
    %cst_7 = arith.constant dense<0.000000e+00> : vector<128x32xf32>
    %8 = tpu.matmul %6, %7, %cst_7 {dimension_numbers = #tpu.dot_dimension_numbers<[1], [0], [0], [1], [0, 0, 1, 1], [], []>} : vector<128x32xbf16>, vector<32x32xbf16>, vector<128x32xf32> -> vector<128x32xf32>
    %c0_8 = arith.constant 0 : index
    %c0_9 = arith.constant 0 : index
    %9 = vector.load %arg5[%c0_8, %c0_9] : memref<1x32xf32, #tpu.memory_space<vmem>>, vector<1x32xf32>
    %10 = vector.broadcast %9 : vector<1x32xf32> to vector<128x32xf32>
    %11 = arith.addf %8, %10 : vector<128x32xf32>
    %12 = arith.mulf %11, %11 : vector<128x32xf32>
    %13 = arith.mulf %11, %12 : vector<128x32xf32>
    %cst_10 = arith.constant 4.471500e-02 : f32
    %14 = vector.broadcast %cst_10 : f32 to vector<128x32xf32>
    %15 = arith.mulf %14, %13 : vector<128x32xf32>
    %16 = arith.addf %11, %15 : vector<128x32xf32>
    %cst_11 = arith.constant 0.797884583 : f32
    %17 = vector.broadcast %cst_11 : f32 to vector<128x32xf32>
    %18 = arith.mulf %17, %16 : vector<128x32xf32>
    %19 = math.tanh %18 : vector<128x32xf32>
    %cst_12 = arith.constant 1.000000e+00 : f32
    %20 = vector.broadcast %cst_12 : f32 to vector<128x32xf32>
    %21 = arith.addf %20, %19 : vector<128x32xf32>
    %cst_13 = arith.constant 5.000000e-01 : f32
    %22 = vector.broadcast %cst_13 : f32 to vector<128x32xf32>
    %23 = arith.mulf %22, %21 : vector<128x32xf32>
    %24 = arith.mulf %11, %23 : vector<128x32xf32>
    %25 = arith.truncf %24 : vector<128x32xf32> to vector<128x32xbf16>
    %c0_14 = arith.constant 0 : index
    %c0_15 = arith.constant 0 : index
    %26 = vector.load %arg6[%c0_14, %c0_15] : memref<128x32xbf16, #tpu.memory_space<vmem>>, vector<128x32xbf16>
    tpu.vector_store %arg6[%c0_14, %c0_15], %25 {strides = array<i32>} : memref<128x32xbf16, #tpu.memory_space<vmem>>, vector<128x32xbf16>,
    return
  }
  func.func @transform_0(%arg0: i32) -> (i32, i32) {
    %c0_i32 = arith.constant 0 : i32
    %c0_i32_0 = arith.constant 0 : i32
    return %arg0, %c0_i32 : i32, i32
  }
  func.func @transform_1(%arg0: i32) -> (i32, i32) {
    %c0_i32 = arith.constant 0 : i32
    %c0_i32_0 = arith.constant 0 : i32
    %c0_i32_1 = arith.constant 0 : i32
    return %c0_i32, %c0_i32_0 : i32, i32
  }
  func.func @transform_2(%arg0: i32) -> (i32, i32) {
    %c0_i32 = arith.constant 0 : i32
    %c0_i32_0 = arith.constant 0 : i32
    %c0_i32_1 = arith.constant 0 : i32
    return %c0_i32, %c0_i32_0 : i32, i32
  }
  func.func @transform_3(%arg0: i32) -> (i32, i32) {
    %c0_i32 = arith.constant 0 : i32
    %c0_i32_0 = arith.constant 0 : i32
    %c0_i32_1 = arith.constant 0 : i32
    return %c0_i32, %c0_i32_0 : i32, i32
  }
  func.func @transform_4(%arg0: i32) -> (i32, i32) {
    %c0_i32 = arith.constant 0 : i32
    %c0_i32_0 = arith.constant 0 : i32
    %c0_i32_1 = arith.constant 0 : i32
    return %c0_i32, %c0_i32_0 : i32, i32
  }
  func.func @transform_5(%arg0: i32) -> (i32, i32) {
    %c0_i32 = arith.constant 0 : i32
    %c0_i32_0 = arith.constant 0 : i32
    return %arg0, %c0_i32 : i32, i32
  }
}

module attributes {stable_mosaic.version = 11 : i64} {
  func.func @_linear_kernel(%arg0: i32, %arg1: memref<64x128xbf16, #tpu.memory_space<vmem>>, %arg2: memref<128x64xbf16, #tpu.memory_space<vmem>>, %arg3: memref<1x64xf32, #tpu.memory_space<vmem>>, %arg4: memref<64x64xbf16, #tpu.memory_space<vmem>>) attributes {dimension_semantics = [#tpu.dimension_semantics<parallel>], iteration_bounds = array<i64: 1>, scalar_prefetch = 0 : i64, scratch_operands = 0 : i64, tpu.core_type = #tpu.core_type<tc>, window_params = [{transform_indices = @transform_0, window_bounds = array<i64: 64, 128>}, {pipeline_mode = #tpu.pipeline_mode<synchronous>, transform_indices = @transform_1, window_bounds = array<i64: 128, 64>}, {pipeline_mode = #tpu.pipeline_mode<synchronous>, transform_indices = @transform_2, window_bounds = array<i64: 1, 64>}, {transform_indices = @transform_3, window_bounds = array<i64: 64, 64>}]} {
    %c0 = arith.constant 0 : index
    %c0_0 = arith.constant 0 : index
    %0 = vector.load %arg1[%c0, %c0_0] : memref<64x128xbf16, #tpu.memory_space<vmem>>, vector<64x128xbf16>
    %c0_1 = arith.constant 0 : index
    %c0_2 = arith.constant 0 : index
    %1 = vector.load %arg2[%c0_1, %c0_2] : memref<128x64xbf16, #tpu.memory_space<vmem>>, vector<128x64xbf16>
    %cst = arith.constant dense<0.000000e+00> : vector<64x64xf32>
    %2 = tpu.matmul %0, %1, %cst {dimension_numbers = #tpu.dot_dimension_numbers<[1], [0], [0], [1], [0, 0, 1, 1], [], []>} : vector<64x128xbf16>, vector<128x64xbf16>, vector<64x64xf32> -> vector<64x64xf32>
    %c0_3 = arith.constant 0 : index
    %c0_4 = arith.constant 0 : index
    %3 = vector.load %arg3[%c0_3, %c0_4] : memref<1x64xf32, #tpu.memory_space<vmem>>, vector<1x64xf32>
    %4 = vector.broadcast %3 : vector<1x64xf32> to vector<64x64xf32>
    %5 = arith.addf %2, %4 : vector<64x64xf32>
    %6 = arith.mulf %5, %5 : vector<64x64xf32>
    %7 = arith.mulf %5, %6 : vector<64x64xf32>
    %cst_5 = arith.constant 4.471500e-02 : f32
    %8 = vector.broadcast %cst_5 : f32 to vector<64x64xf32>
    %9 = arith.mulf %8, %7 : vector<64x64xf32>
    %10 = arith.addf %5, %9 : vector<64x64xf32>
    %cst_6 = arith.constant 0.797884583 : f32
    %11 = vector.broadcast %cst_6 : f32 to vector<64x64xf32>
    %12 = arith.mulf %11, %10 : vector<64x64xf32>
    %13 = math.tanh %12 : vector<64x64xf32>
    %cst_7 = arith.constant 1.000000e+00 : f32
    %14 = vector.broadcast %cst_7 : f32 to vector<64x64xf32>
    %15 = arith.addf %14, %13 : vector<64x64xf32>
    %cst_8 = arith.constant 5.000000e-01 : f32
    %16 = vector.broadcast %cst_8 : f32 to vector<64x64xf32>
    %17 = arith.mulf %16, %15 : vector<64x64xf32>
    %18 = arith.mulf %5, %17 : vector<64x64xf32>
    %19 = arith.truncf %18 : vector<64x64xf32> to vector<64x64xbf16>
    %c0_9 = arith.constant 0 : index
    %c0_10 = arith.constant 0 : index
    %20 = vector.load %arg4[%c0_9, %c0_10] : memref<64x64xbf16, #tpu.memory_space<vmem>>, vector<64x64xbf16>
    tpu.vector_store %arg4[%c0_9, %c0_10], %19 {strides = array<i32>} : memref<64x64xbf16, #tpu.memory_space<vmem>>, vector<64x64xbf16>,
    return
  }
  func.func @transform_0(%arg0: i32) -> (i32, i32) {
    %c0_i32 = arith.constant 0 : i32
    %c0_i32_0 = arith.constant 0 : i32
    return %arg0, %c0_i32 : i32, i32
  }
  func.func @transform_1(%arg0: i32) -> (i32, i32) {
    %c0_i32 = arith.constant 0 : i32
    %c0_i32_0 = arith.constant 0 : i32
    %c0_i32_1 = arith.constant 0 : i32
    return %c0_i32, %c0_i32_0 : i32, i32
  }
  func.func @transform_2(%arg0: i32) -> (i32, i32) {
    %c0_i32 = arith.constant 0 : i32
    %c0_i32_0 = arith.constant 0 : i32
    %c0_i32_1 = arith.constant 0 : i32
    return %c0_i32, %c0_i32_0 : i32, i32
  }
  func.func @transform_3(%arg0: i32) -> (i32, i32) {
    %c0_i32 = arith.constant 0 : i32
    %c0_i32_0 = arith.constant 0 : i32
    return %arg0, %c0_i32 : i32, i32
  }
}

module attributes {stable_mosaic.version = 11 : i64} {
  func.func @_pair_reduce_kernel(%arg0: i32, %arg1: i32, %arg2: memref<16x128xbf16, #tpu.memory_space<vmem>>, %arg3: memref<16x128xbf16, #tpu.memory_space<vmem>>, %arg4: memref<8x128xf32, #tpu.memory_space<vmem>>) attributes {dimension_semantics = [#tpu.dimension_semantics<parallel>, #tpu.dimension_semantics<arbitrary>], iteration_bounds = array<i64: 1, 1>, scalar_prefetch = 0 : i64, scratch_operands = 0 : i64, tpu.core_type = #tpu.core_type<tc>, window_params = [{transform_indices = @transform_0, window_bounds = array<i64: 16, 128>}, {transform_indices = @transform_1, window_bounds = array<i64: 16, 128>}, {transform_indices = @transform_2, window_bounds = array<i64: 8, 128>}]} {
    %c0_i32 = arith.constant 0 : i32
    %0 = arith.cmpi eq, %arg1, %c0_i32 : i32
    %1 = arith.extui %0 : i1 to i32
    %c0_i32_0 = arith.constant 0 : i32
    %2 = arith.cmpi ne, %1, %c0_i32_0 : i32
    scf.if %2 {
      %cst_8 = arith.constant 0.000000e+00 : f32
      %14 = vector.broadcast %cst_8 : f32 to vector<8x128xf32>
      %c0_9 = arith.constant 0 : index
      %c0_10 = arith.constant 0 : index
      %15 = vector.load %arg4[%c0_9, %c0_10] : memref<8x128xf32, #tpu.memory_space<vmem>>, vector<8x128xf32>
      tpu.vector_store %arg4[%c0_9, %c0_10], %14 {strides = array<i32>} : memref<8x128xf32, #tpu.memory_space<vmem>>, vector<8x128xf32>,
    } else {
    }
    %c0 = arith.constant 0 : index
    %c0_1 = arith.constant 0 : index
    %3 = vector.load %arg2[%c0, %c0_1] : memref<16x128xbf16, #tpu.memory_space<vmem>>, vector<16x128xbf16>
    %4 = arith.extf %3 : vector<16x128xbf16> to vector<16x128xf32>
    %c0_2 = arith.constant 0 : index
    %c0_3 = arith.constant 0 : index
    %5 = vector.load %arg3[%c0_2, %c0_3] : memref<16x128xbf16, #tpu.memory_space<vmem>>, vector<16x128xbf16>
    %6 = arith.extf %5 : vector<16x128xbf16> to vector<16x128xf32>
    %7 = arith.subf %4, %6 : vector<16x128xf32>
    %8 = math.absf %7 : vector<16x128xf32>
    %c0_4 = arith.constant 0 : index
    %c0_5 = arith.constant 0 : index
    %9 = vector.load %arg4[%c0_4, %c0_5] : memref<8x128xf32, #tpu.memory_space<vmem>>, vector<8x128xf32>
    %10 = vector.shape_cast %8 : vector<16x128xf32> to vector<2x8x128xf32>
    %cst = arith.constant dense<0.000000e+00> : vector<8x128xf32>
    %11 = vector.multi_reduction <add>, %10, %cst [0] : vector<2x8x128xf32> to vector<8x128xf32>
    %12 = arith.addf %9, %11 : vector<8x128xf32>
    %c0_6 = arith.constant 0 : index
    %c0_7 = arith.constant 0 : index
    %13 = vector.load %arg4[%c0_6, %c0_7] : memref<8x128xf32, #tpu.memory_space<vmem>>, vector<8x128xf32>
    tpu.vector_store %arg4[%c0_6, %c0_7], %12 {strides = array<i32>} : memref<8x128xf32, #tpu.memory_space<vmem>>, vector<8x128xf32>,
    return
  }
  func.func @transform_0(%arg0: i32, %arg1: i32) -> (i32, i32) {
    %c1_i32 = arith.constant 1 : i32
    %0 = arith.muli %arg0, %c1_i32 : i32
    %1 = arith.addi %0, %arg1 : i32
    %c0_i32 = arith.constant 0 : i32
    %c0_i32_0 = arith.constant 0 : i32
    return %1, %c0_i32 : i32, i32
  }
  func.func @transform_1(%arg0: i32, %arg1: i32) -> (i32, i32) {
    %c1_i32 = arith.constant 1 : i32
    %0 = arith.muli %arg0, %c1_i32 : i32
    %1 = arith.addi %0, %arg1 : i32
    %c0_i32 = arith.constant 0 : i32
    %c0_i32_0 = arith.constant 0 : i32
    return %1, %c0_i32 : i32, i32
  }
  func.func @transform_2(%arg0: i32, %arg1: i32) -> (i32, i32) {
    %c0_i32 = arith.constant 0 : i32
    %c0_i32_0 = arith.constant 0 : i32
    return %arg0, %c0_i32 : i32, i32
  }
}

module attributes {stable_mosaic.version = 11 : i64} {
  func.func @_pair_reduce_kernel(%arg0: i32, %arg1: i32, %arg2: memref<48x128xf32, #tpu.memory_space<vmem>>, %arg3: memref<48x128xf32, #tpu.memory_space<vmem>>, %arg4: memref<8x128xf32, #tpu.memory_space<vmem>>) attributes {dimension_semantics = [#tpu.dimension_semantics<parallel>, #tpu.dimension_semantics<arbitrary>], iteration_bounds = array<i64: 1, 1>, scalar_prefetch = 0 : i64, scratch_operands = 0 : i64, tpu.core_type = #tpu.core_type<tc>, window_params = [{transform_indices = @transform_0, window_bounds = array<i64: 48, 128>}, {transform_indices = @transform_1, window_bounds = array<i64: 48, 128>}, {transform_indices = @transform_2, window_bounds = array<i64: 8, 128>}]} {
    %c0_i32 = arith.constant 0 : i32
    %0 = arith.cmpi eq, %arg1, %c0_i32 : i32
    %1 = arith.extui %0 : i1 to i32
    %c0_i32_0 = arith.constant 0 : i32
    %2 = arith.cmpi ne, %1, %c0_i32_0 : i32
    scf.if %2 {
      %cst_8 = arith.constant 0.000000e+00 : f32
      %12 = vector.broadcast %cst_8 : f32 to vector<8x128xf32>
      %c0_9 = arith.constant 0 : index
      %c0_10 = arith.constant 0 : index
      %13 = vector.load %arg4[%c0_9, %c0_10] : memref<8x128xf32, #tpu.memory_space<vmem>>, vector<8x128xf32>
      tpu.vector_store %arg4[%c0_9, %c0_10], %12 {strides = array<i32>} : memref<8x128xf32, #tpu.memory_space<vmem>>, vector<8x128xf32>,
    } else {
    }
    %c0 = arith.constant 0 : index
    %c0_1 = arith.constant 0 : index
    %3 = vector.load %arg2[%c0, %c0_1] : memref<48x128xf32, #tpu.memory_space<vmem>>, vector<48x128xf32>
    %c0_2 = arith.constant 0 : index
    %c0_3 = arith.constant 0 : index
    %4 = vector.load %arg3[%c0_2, %c0_3] : memref<48x128xf32, #tpu.memory_space<vmem>>, vector<48x128xf32>
    %5 = arith.subf %3, %4 : vector<48x128xf32>
    %6 = arith.mulf %5, %5 : vector<48x128xf32>
    %c0_4 = arith.constant 0 : index
    %c0_5 = arith.constant 0 : index
    %7 = vector.load %arg4[%c0_4, %c0_5] : memref<8x128xf32, #tpu.memory_space<vmem>>, vector<8x128xf32>
    %8 = vector.shape_cast %6 : vector<48x128xf32> to vector<6x8x128xf32>
    %cst = arith.constant dense<0.000000e+00> : vector<8x128xf32>
    %9 = vector.multi_reduction <add>, %8, %cst [0] : vector<6x8x128xf32> to vector<8x128xf32>
    %10 = arith.addf %7, %9 : vector<8x128xf32>
    %c0_6 = arith.constant 0 : index
    %c0_7 = arith.constant 0 : index
    %11 = vector.load %arg4[%c0_6, %c0_7] : memref<8x128xf32, #tpu.memory_space<vmem>>, vector<8x128xf32>
    tpu.vector_store %arg4[%c0_6, %c0_7], %10 {strides = array<i32>} : memref<8x128xf32, #tpu.memory_space<vmem>>, vector<8x128xf32>,
    return
  }
  func.func @transform_0(%arg0: i32, %arg1: i32) -> (i32, i32) {
    %c1_i32 = arith.constant 1 : i32
    %0 = arith.muli %arg0, %c1_i32 : i32
    %1 = arith.addi %0, %arg1 : i32
    %c0_i32 = arith.constant 0 : i32
    %c0_i32_0 = arith.constant 0 : i32
    return %1, %c0_i32 : i32, i32
  }
  func.func @transform_1(%arg0: i32, %arg1: i32) -> (i32, i32) {
    %c1_i32 = arith.constant 1 : i32
    %0 = arith.muli %arg0, %c1_i32 : i32
    %1 = arith.addi %0, %arg1 : i32
    %c0_i32 = arith.constant 0 : i32
    %c0_i32_0 = arith.constant 0 : i32
    return %1, %c0_i32 : i32, i32
  }
  func.func @transform_2(%arg0: i32, %arg1: i32) -> (i32, i32) {
    %c0_i32 = arith.constant 0 : i32
    %c0_i32_0 = arith.constant 0 : i32
    return %arg0, %c0_i32 : i32, i32
  }
}

</mosaic_0001>

<bundles_post_ra>
// kernel: _forward_impl.4
= control target key start
LH: loop header
LB: loop body
LE: loop exit
PB: predicated region body
PF: predicated region fallthrough
CT: control target
= control target key end

     0   :  { %s1225_s18 = smov 0   ;;  %s1486_s0 = inlined_call_operand.vmem [shape: bf16[256,147], index: 0, kind: input, shape index: {}]   ;;  %s1487_s1 = inlined_call_operand.vmem [shape: bf16[147,32], index: 1, kind: input, shape index: {}]   ;;  %s1488_s2 = inlined_call_operand.vmem [shape: f32[1,32], index: 2, kind: input, shape index: {}]   ;;  %s1489_s3 = inlined_call_operand.vmem [shape: bf16[32,32], index: 3, kind: input, shape index: {}]   ;;  %s1490_s4 = inlined_call_operand.vmem [shape: f32[1,32], index: 4, kind: input, shape index: {}]   ;;  %s1491_s5 = inlined_call_operand.vmem [shape: bf16[256,32], index: 5, kind: output, shape index: {}]  }
   0x1 LB: > { %s966_s19 = sadd.s32 4294967295, %s1191_s18   ;;  %p970_p0 = scmp.ge.s32.totalorder %s1191_s18, 1  ;;  %s1191_s18 = sphi %s1225_s18, %s15_s18  }
   0x2   : > { %p189_p1 = scmp.lt.s32.totalorder %s1191_s18, 3 }
   0x4   : > { %p190_p2 = pnand %p970_p0, %p189_p1 }
   0x5   : > { %v1117_v0 = vld [vmem:[%s1487_s1] sm:$0xff] (!%p190_p2)   ;;  %v1193_v1 = vmov (!%p190_p2), 0   ;;  %v1118_v2 = vld [vmem:[%s1487_s1 + $0x8] sm:$0xff] (!%p190_p2)   ;;  %v1119_v3 = vld [vmem:[%s1487_s1 + $0x10] sm:$0xff] (!%p190_p2)   ;;  %s971_s26 = sshll.u32 (!%p190_p2), %s966_s19, 4  ;;  %vm403_vm0 = vcmask (!%p190_p2), 154624  }
   0x6   : > { %193 = sbr.rel (%p190_p2) target bundleno = 565 (0x235), region = 40  ;;  %435 = vmatprep.subr.bf16.mxu0 (!%p190_p2), %v1193_v1  ;;  %1087 = vmatprep.subr.bf16.mxu1 (!%p190_p2), %v1193_v1  ;;  %p219_p3 = scmp.lt.s32.totalorder (!%p190_p2), %s971_s26, 31  ;;  %v1120_v4 = vld [vmem:[%s1487_s1 + $0x18] sm:$0xff] (!%p190_p2)   ;;  %v1121_v5 = vld [vmem:[%s1487_s1 + $0x20] sm:$0xff] (!%p190_p2)   ;;  %v1122_v7 = vld [vmem:[%s1487_s1 + $0x28] sm:$0xff] (!%p190_p2)   ;;  %vm428_vm1 = vcmask (!%p190_p2), 1040384  }
   0x7   : > { %436 = vmatpush1.bf16.msra.mxu0 (!%p190_p2), %v1117_v0  ;;  %1097 = vmatpush1.bf16.msra.mxu1 (!%p190_p2), %v1117_v0  ;;  %v1123_v9 = vld [vmem:[%s1487_s1 + $0x30] sm:$0xff] (!%p190_p2)   ;;  %v1124_v10 = vld [vmem:[%s1487_s1 + $0x38] sm:$0xff] (!%p190_p2)   ;;  %vm429_vm2 = vcmask (!%p190_p2), 1041408   ;;  %v1194_v11 = vmov (!%p190_p2), 65535   ;;  %v1125_v13 = vld [vmem:[%s1487_s1 + $0x40] sm:$0xff] (!%p190_p2)   ;;  %vm563_vm3 = vcmask (!%p190_p2), 261120  }
   0x8   : > { %437 = vmatprep.subr.bf16.mxu0 (!%p190_p2), %v1193_v1  ;;  %1088 = vmatprep.subr.bf16.mxu1 (!%p190_p2), %v1193_v1  ;;  %v430_v12 = vsel (!%p190_p2), %vm428_vm1, 4294967295, %v1194_v11  ;;  %v1126_v14 = vld [vmem:[%s1487_s1 + $0x48] ss:$0 sps:$4 sm:$0x33] (!%p190_p2)   ;;  %v1151_v31 = vld [vmem:[%s1489_s3] sm:$0xff] (!%p190_p2)   ;;  %vm893_vm4 = vcmask (!%p190_p2), 257024  }
   0x9   : > { %v431_v15 = vsel (!%p190_p2), %vm429_vm2, %v430_v12, 0  ;;  %v1152_v32 = vld [vmem:[%s1489_s3 + $0x8] sm:$0xff] (!%p190_p2)   ;;  %v976_v33 = vld [vmem:[%s1488_s2] ss:$0 sm:$0xff] (!%p190_p2) }
   0xa   : > { %v433_v16 = vand.u32 (!%p190_p2), %v1126_v14, %v431_v15 }
   0xb   : > { %438 = vmatpush1.bf16.msra.mxu0 (!%p190_p2), %v1118_v2  ;;  %1098 = vmatpush1.bf16.msra.mxu1 (!%p190_p2), %v1118_v2 }
   0xc   : > { %439 = vmatprep.subr.bf16.mxu0 (!%p190_p2), %v1193_v1  ;;  %1089 = vmatprep.subr.bf16.mxu1 (!%p190_p2), %v1193_v1 }
   0xd   : > { %s1493_s26 = smov (!%p219_p3, %s971_s26), 31 }
   0xe   : > { %s1040_s29 = sshll.u32 %s1493_s26, 3  ;;  %s975_s30 = sshll.u32 %s1493_s26, 2 }
   0xf   : > { %440 = vmatpush1.bf16.msra.mxu0 %v1119_v3  ;;  %1099 = vmatpush1.bf16.msra.mxu1 %v1119_v3  ;;  %s1251_s7 = scalar_lea.vmem %s1486_s0, %s1040_s29  ;;  %s1378_s26 = scalar_lea.vmem %s1491_s5, %s975_s30 }
  0x10   : > { %441 = vmatprep.subr.bf16.mxu0 %v1193_v1  ;;  %1090 = vmatprep.subr.bf16.mxu1 %v1193_v1  ;;  %v1129_v6 = vld [vmem:[%s1251_s7 + $0x4] ss:$8 sps:$4 sm:$0xff]   ;;  %v1127_v17 = vld [vmem:[%s1251_s7] ss:$8 sps:$4 sm:$0xff]   ;;  %v1130_v19 = vld [vmem:[%s1251_s7 + $0x14] ss:$8 sps:$4 sm:$0xff]  }
  0x11   : > { %1003 = vmatprep.mubr.msk.bf16.mxu0 %vm403_vm0, %v1129_v6  ;;  %v1144_v8 = vld [vmem:[%s1251_s7 + $0x64] ss:$8 sps:$4 sm:$0xff]   ;;  %v1142_v18 = vld [vmem:[%s1251_s7 + $0x60] ss:$8 sps:$4 sm:$0xff]   ;;  %v1148_v20 = vld [vmem:[%s1251_s7 + $0x74] ss:$8 sps:$4 sm:$0xff]  }
  0x12   : > { %1009 = vmatprep.mubr.msk.bf16.mxu1 %vm403_vm0, %v1144_v8  ;;  %v1132_v21 = vld [vmem:[%s1251_s7 + $0x10] ss:$8 sps:$4 sm:$0xff]   ;;  %v1133_v23 = vld [vmem:[%s1251_s7 + $0x24] ss:$8 sps:$4 sm:$0xff]   ;;  %v1135_v24 = vld [vmem:[%s1251_s7 + $0x20] ss:$8 sps:$4 sm:$0xff]  }
  0x13   : > { %442 = vmatpush1.bf16.msra.mxu0 %v1120_v4  ;;  %1100 = vmatpush1.bf16.msra.mxu1 %v1120_v4  ;;  %v1150_v22 = vld [vmem:[%s1251_s7 + $0x70] ss:$8 sps:$4 sm:$0xff]   ;;  %v1136_v25 = vld [vmem:[%s1251_s7 + $0x34] ss:$8 sps:$4 sm:$0xff]   ;;  %v1139_v27 = vld [vmem:[%s1251_s7 + $0x44] ss:$8 sps:$4 sm:$0xff]  }
  0x14   : > { %443 = vmatprep.subr.bf16.mxu0 %v1193_v1  ;;  %1091 = vmatprep.subr.bf16.mxu1 %v1193_v1  ;;  %v1138_v26 = vld [vmem:[%s1251_s7 + $0x30] ss:$8 sps:$4 sm:$0xff]   ;;  %v1141_v28 = vld [vmem:[%s1251_s7 + $0x40] ss:$8 sps:$4 sm:$0xff]   ;;  %v1145_v29 = vld [vmem:[%s1251_s7 + $0x54] ss:$8 sps:$4 sm:$0xff]  }
  0x15   : > { %v1147_v30 = vld [vmem:[%s1251_s7 + $0x50] ss:$8 sps:$4 sm:$0xff]  }
  0x17   : > { %444 = vmatpush1.bf16.msra.mxu0 %v1121_v5  ;;  %1101 = vmatpush1.bf16.msra.mxu1 %v1121_v5 }
  0x18   : > { %445 = vmatprep.subr.bf16.mxu0 %v1193_v1  ;;  %1092 = vmatprep.subr.bf16.mxu1 %v1193_v1 }
  0x1b   : > { %446 = vmatpush1.bf16.msra.mxu0 %v1122_v7  ;;  %1102 = vmatpush1.bf16.msra.mxu1 %v1122_v7 }
  0x1c   : > { %447 = vmatprep.subr.bf16.mxu0 %v1193_v1  ;;  %1093 = vmatprep.subr.bf16.mxu1 %v1193_v1 }
  0x1f   : > { %448 = vmatpush1.bf16.msra.mxu0 %v1123_v9  ;;  %1103 = vmatpush1.bf16.msra.mxu1 %v1123_v9 }
  0x20   : > { %449 = vmatprep.subr.bf16.mxu0 %v1193_v1  ;;  %1094 = vmatprep.subr.bf16.mxu1 %v1193_v1 }
  0x23   : > { %450 = vmatpush1.bf16.msra.mxu0 %v1124_v10  ;;  %1104 = vmatpush1.bf16.msra.mxu1 %v1124_v10 }
  0x24   : > { %451 = vmatprep.subr.bf16.mxu0 %v1193_v1  ;;  %1095 = vmatprep.subr.bf16.mxu1 %v1193_v1 }
  0x27   : > { %452 = vmatpush1.bf16.msra.mxu0 %v1125_v13  ;;  %1105 = vmatpush1.bf16.msra.mxu1 %v1125_v13 }
  0x28   : > { %453 = vmatprep.subr.bf16.mxu0 %v1193_v1  ;;  %1096 = vmatprep.subr.bf16.mxu1 %v1193_v1 }
  0x2b   : > { %454 = vmatpush1.bf16.msra.mxu0 %v433_v16  ;;  %1106 = vmatpush1.bf16.msra.mxu1 %v433_v16 }
  0x2c   : > { %1067 = vmatprep.subr.bf16.mxu1 %v1151_v31 }
  0x2e   : > { %468 = vmatmul.mubr.bf16.vlgmr.msra.gmra.mrb[0].mxu0 %v1127_v17  ;;  %516 = vmatmul.mubr.bf16.vlgmr.msra.gmra.mrb[0].mxu1 %v1142_v18 }
  0x2f   : > { %1004 = vmatprep.mubr.msk.bf16.mxu0 %vm403_vm0, %v1130_v19  ;;  %1010 = vmatprep.mubr.msk.bf16.mxu1 %vm403_vm0, %v1148_v20 }
  0x30   : > { %1068 = vmatpush3.bf16.msra.mxu1 %v1151_v31 }
  0x31   : > { %1069 = vmatprep.subr.bf16.mxu1 %v1152_v32 }
  0x34   : > { %1070 = vmatpush3.bf16.msra.mxu1 %v1152_v32 }
  0x36   : > { %476 = vmatmul.mubr.bf16.gmra.mrb[4].mxu0 %v1132_v21  ;;  %524 = vmatmul.mubr.bf16.gmra.mrb[4].mxu1 %v1150_v22 }
  0x37   : > { %1005 = vmatprep.mubr.msk.bf16.mxu0 %vm403_vm0, %v1133_v23 }
  0x3e   : > { %484 = vmatmul.mubr.bf16.gmra.mrb[8].mxu0 %v1135_v24 }
  0x3f   : > { %1006 = vmatprep.mubr.msk.bf16.mxu0 %vm403_vm0, %v1136_v25 }
  0x46   : > { %492 = vmatmul.mubr.bf16.gmra.mrb[12].mxu0 %v1138_v26  ;;  %v1315_v26 = vld [vmem:[%s1490_s4] ss:$0 sm:$0xff] }
  0x47   : > { %1007 = vmatprep.mubr.msk.bf16.mxu0 %vm403_vm0, %v1139_v27 }
  0x4e   : > { %500 = vmatmul.mubr.bf16.gmra.mrb[16].mxu0 %v1141_v28 }
  0x4f   : > { %1008 = vmatprep.mubr.msk.bf16.mxu0 %vm403_vm0, %v1145_v29 }
  0x56   : > { %508 = vmatmul.mubr.bf16.gmra.mrb[20].mxu0 %v1147_v30 }
 0x101   : > { %v469_v34 = vpop.f32.mrb[0].mxu0  ;;  %v517_v35 = vpop.f32.mrb[0].mxu1 }
 0x102   : > { %v471_v36 = vpop.f32.mrb[1].mxu0  ;;  %v518_v37 = vadd.f32 %v976_v33, %v517_v35  ;;  %v519_v38 = vpop.f32.mrb[1].mxu1  ;;  %v470_v41 = vadd.f32 %v976_v33, %v469_v34 }
 0x103   : > { %v472_v39 = vpop.f32.mrb[2].mxu0  ;;  %v520_v40 = vpop.f32.mrb[2].mxu1 }
 0x104   : > { %v473_v42 = vadd.f32 %v976_v33, %v472_v39  ;;  %v474_v43 = vpop.f32.mrb[3].mxu0  ;;  %v521_v44 = vadd.f32 %v976_v33, %v520_v40  ;;  %v522_v45 = vpop.f32.mrb[3].mxu1 }
 0x106   : > { %v532_v46 = vpack.c.bf16 %v473_v42, %v470_v41  ;;  %v538_v47 = vpack.c.bf16 %v521_v44, %v518_v37 }
 0x108   : > { %1071 = vmatprep.mubr.msk.bf16.mxu1 %vm563_vm3, %v532_v46 }
 0x109   : > { %v477_v48 = vpop.f32.mrb[4].mxu0  ;;  %v525_v49 = vpop.f32.mrb[4].mxu1 }
 0x10a   : > { %v479_v50 = vpop.f32.mrb[5].mxu0  ;;  %v526_v51 = vadd.f32 %v976_v33, %v525_v49  ;;  %v527_v52 = vpop.f32.mrb[5].mxu1  ;;  %v478_v55 = vadd.f32 %v976_v33, %v477_v48 }
 0x10b   : > { %v480_v53 = vpop.f32.mrb[6].mxu0  ;;  %v528_v54 = vpop.f32.mrb[6].mxu1 }
 0x10c   : > { %v481_v56 = vadd.f32 %v976_v33, %v480_v53  ;;  %v482_v57 = vpop.f32.mrb[7].mxu0  ;;  %v529_v58 = vadd.f32 %v976_v33, %v528_v54  ;;  %v530_v59 = vpop.f32.mrb[7].mxu1 }
 0x10e   : > { %v533_v60 = vpack.c.bf16 %v481_v56, %v478_v55  ;;  %v539_v61 = vpack.c.bf16 %v529_v58, %v526_v51 }
 0x110   : > { %1072 = vmatmul.mubr.msk.bf16.vlgmr.msra.gmra.mrb[8].mxu1 %vm563_vm3, %v533_v60 }
 0x111   : > { %v485_v62 = vpop.f32.mrb[8].mxu0 }
 0x112   : > { %v487_v63 = vpop.f32.mrb[9].mxu0  ;;  %v486_v1 = vadd.f32 %v976_v33, %v485_v62 }
 0x113   : > { %v488_v0 = vpop.f32.mrb[10].mxu0 }
 0x114   : > { %v489_v2 = vadd.f32 %v976_v33, %v488_v0  ;;  %v490_v3 = vpop.f32.mrb[11].mxu0 }
 0x116   : > { %v534_v4 = vpack.c.bf16 %v489_v2, %v486_v1 }
 0x118   : > { %1075 = vmatprep.mubr.msk.bf16.mxu1 %vm563_vm3, %v534_v4 }
 0x119   : > { %v493_v5 = vpop.f32.mrb[12].mxu0 }
 0x11a   : > { %v495_v6 = vpop.f32.mrb[13].mxu0  ;;  %v494_v8 = vadd.f32 %v976_v33, %v493_v5 }
 0x11b   : > { %v496_v7 = vpop.f32.mrb[14].mxu0 }
 0x11c   : > { %v497_v9 = vadd.f32 %v976_v33, %v496_v7  ;;  %v498_v10 = vpop.f32.mrb[15].mxu0 }
 0x11e   : > { %v535_v11 = vpack.c.bf16 %v497_v9, %v494_v8 }
 0x120   : > { %1076 = vmatmul.mubr.msk.bf16.gmra.mrb[12].mxu1 %vm563_vm3, %v535_v11 }
 0x121   : > { %v501_v12 = vpop.f32.mrb[16].mxu0 }
 0x122   : > { %v503_v13 = vpop.f32.mrb[17].mxu0  ;;  %v502_v15 = vadd.f32 %v976_v33, %v501_v12 }
 0x123   : > { %v504_v14 = vpop.f32.mrb[18].mxu0 }
 0x124   : > { %v505_v16 = vadd.f32 %v976_v33, %v504_v14  ;;  %v506_v17 = vpop.f32.mrb[19].mxu0 }
 0x126   : > { %v536_v18 = vpack.c.bf16 %v505_v16, %v502_v15 }
 0x128   : > { %1079 = vmatprep.mubr.msk.bf16.mxu1 %vm563_vm3, %v536_v18 }
 0x129   : > { %v509_v19 = vpop.f32.mrb[20].mxu0 }
 0x12a   : > { %v511_v20 = vpop.f32.mrb[21].mxu0  ;;  %v510_v22 = vadd.f32 %v976_v33, %v509_v19 }
 0x12b   : > { %v512_v21 = vpop.f32.mrb[22].mxu0 }
 0x12c   : > { %v513_v23 = vadd.f32 %v976_v33, %v512_v21  ;;  %v514_v24 = vpop.f32.mrb[23].mxu0 }
 0x12e   : > { %v537_v25 = vpack.c.bf16 %v513_v23, %v510_v22 }
 0x130   : > { %1080 = vmatmul.mubr.msk.bf16.gmra.mrb[16].mxu1 %vm563_vm3, %v537_v25 }
 0x131   : > { %1083 = vmatprep.mubr.msk.bf16.mxu1 %vm563_vm3, %v538_v47 }
 0x138   : > { %1084 = vmatmul.mubr.msk.bf16.gmra.mrb[20].mxu1 %vm563_vm3, %v539_v61 }
 0x1e3   : > { %v1073_v27 = vpop.f32.mrb[8].mxu1 }
 0x1e4   : > { %v1318_v28 = vadd.f32 %v1073_v27, %v1315_v26  ;;  %v622_v29 = vpop.f32.mrb[9].mxu1 }
 0x1e5   : > { %v1321_v30 = vadd.f32 %v1315_v26, %v622_v29  ;;  %v1074_v31 = vpop.f32.mrb[10].mxu1 }
 0x1e6   : > { %v687_v32 = vmul.f32 %v1318_v28, %v1318_v28  ;;  %v1326_v33 = vadd.f32 %v1074_v31, %v1315_v26  ;;  %v625_v34 = vpop.f32.mrb[11].mxu1 }
 0x1e7   : > { %v685_v35 = vmul.f32 %v1321_v30, %v1321_v30  ;;  %v1331_v36 = vadd.f32 %v1315_v26, %v625_v34 }
 0x1e8   : > { %v703_v37 = vmul.f32 %v687_v32, %v1318_v28  ;;  %v688_v38 = vmul.f32 %v1326_v33, %v1326_v33 }
 0x1e9   : > { %v701_v39 = vmul.f32 %v685_v35, %v1321_v30  ;;  %v686_v40 = vmul.f32 %v1331_v36, %v1331_v36 }
 0x1ea   : > { %v719_v41 = vmul.f32 0.044715, %v703_v37  ;;  %v704_v42 = vmul.f32 %v688_v38, %v1326_v33 }
 0x1eb   : > { %v717_v43 = vmul.f32 0.044715, %v701_v39  ;;  %v702_v44 = vmul.f32 %v686_v40, %v1331_v36 }
 0x1ec   : > { %v735_v45 = vadd.f32 %v719_v41, %v1318_v28  ;;  %v720_v46 = vmul.f32 0.044715, %v704_v42 }
 0x1ed   : > { %v733_v47 = vadd.f32 %v717_v43, %v1321_v30  ;;  %v718_v48 = vmul.f32 0.044715, %v702_v44 }
 0x1ee   : > { %v751_v49 = vmul.f32 0.7978846, %v735_v45  ;;  %v736_v50 = vadd.f32 %v720_v46, %v1326_v33 }
 0x1ef   : > { %v749_v51 = vmul.f32 0.7978846, %v733_v47  ;;  %v734_v52 = vadd.f32 %v718_v48, %v1331_v36 }
 0x1f0   : > { %1153 = vtanh.f32 %v751_v49  ;;  %v752_v53 = vmul.f32 0.7978846, %v736_v50 }
 0x1f1   : > { %1155 = vtanh.f32 %v749_v51  ;;  %v750_v54 = vmul.f32 0.7978846, %v734_v52 }
 0x1f2   : > { %1157 = vtanh.f32 %v752_v53 }
 0x1f3   : > { %1159 = vtanh.f32 %v750_v54  ;;  %v1077_v55 = vpop.f32.mrb[12].mxu1 }
 0x1f4   : > { %v1346_v56 = vadd.f32 %v1077_v55, %v1315_v26  ;;  %v638_v57 = vpop.f32.mrb[13].mxu1 }
 0x1f5   : > { %v1349_v58 = vadd.f32 %v1315_v26, %v638_v57  ;;  %v1078_v59 = vpop.f32.mrb[14].mxu1 }
 0x1f6   : > { %v691_v60 = vmul.f32 %v1346_v56, %v1346_v56  ;;  %v1354_v61 = vadd.f32 %v1078_v59, %v1315_v26  ;;  %v641_v62 = vpop.f32.mrb[15].mxu1 }
 0x1f7   : > { %v689_v63 = vmul.f32 %v1349_v58, %v1349_v58  ;;  %v1359_v0 = vadd.f32 %v1315_v26, %v641_v62 }
 0x1f8   : > { %v707_v1 = vmul.f32 %v691_v60, %v1346_v56  ;;  %v692_v2 = vmul.f32 %v1354_v61, %v1354_v61 }
 0x1f9   : > { %v705_v3 = vmul.f32 %v689_v63, %v1349_v58  ;;  %v690_v4 = vmul.f32 %v1359_v0, %v1359_v0 }
 0x1fa   : > { %v1154_v5 = vpop.eup %1153  ;;  %v723_v6 = vmul.f32 0.044715, %v707_v1  ;;  %v708_v7 = vmul.f32 %v692_v2, %v1354_v61 }
 0x1fb   : > { %v1156_v8 = vpop.eup %1155  ;;  %v783_v9 = vadd.f32 1.0, %v1154_v5  ;;  %v721_v10 = vmul.f32 0.044715, %v705_v3  ;;  %v706_v11 = vmul.f32 %v690_v4, %v1359_v0 }
 0x1fc   : > { %v1158_v12 = vpop.eup %1157  ;;  %v781_v13 = vadd.f32 1.0, %v1156_v8  ;;  %v739_v14 = vadd.f32 %v723_v6, %v1346_v56  ;;  %v724_v15 = vmul.f32 0.044715, %v708_v7 }
 0x1fd   : > { %v1160_v16 = vpop.eup %1159  ;;  %v799_v17 = vmul.f32 0.5, %v783_v9  ;;  %v784_v18 = vadd.f32 1.0, %v1158_v12  ;;  %v737_v19 = vadd.f32 %v721_v10, %v1349_v58  ;;  %v722_v20 = vmul.f32 0.044715, %v706_v11 }
 0x1fe   : > { %v797_v21 = vmul.f32 0.5, %v781_v13  ;;  %v782_v22 = vadd.f32 1.0, %v1160_v16  ;;  %v755_v23 = vmul.f32 0.7978846, %v739_v14  ;;  %v740_v24 = vadd.f32 %v724_v15, %v1354_v61 }
 0x1ff   : > { %v815_v25 = vmul.f32 %v799_v17, %v1318_v28  ;;  %v800_v27 = vmul.f32 0.5, %v784_v18  ;;  %v753_v29 = vmul.f32 0.7978846, %v737_v19  ;;  %v738_v31 = vadd.f32 %v722_v20, %v1359_v0 }
 0x200   : > { %v813_v32 = vmul.f32 %v797_v21, %v1321_v30  ;;  %v798_v34 = vmul.f32 0.5, %v782_v22  ;;  %1161 = vtanh.f32 %v755_v23  ;;  %v756_v35 = vmul.f32 0.7978846, %v740_v24 }
 0x201   : > { %v1043_v37 = vpack.c.bf16 %v815_v25, %v815_v25  ;;  %v816_v28 = vmul.f32 %v800_v27, %v1326_v33  ;;  %1163 = vtanh.f32 %v753_v29  ;;  %v754_v38 = vmul.f32 0.7978846, %v738_v31 }
 0x202   : > { %v1041_v39 = vpack.c.bf16 %v813_v32, %v813_v32  ;;  %v814_v40 = vmul.f32 %v798_v34, %v1331_v36  ;;  %1165 = vtanh.f32 %v756_v35 }
 0x203   : > { %896 = vst.msk [vmem:[%s1378_s26 + $0x8] sm:$0xf] %vm893_vm4, %v1043_v37  ;;  %v1044_v41 = vpack.c.bf16 %v816_v28, %v816_v28  ;;  %1167 = vtanh.f32 %v754_v38  ;;  %v1081_v42 = vpop.f32.mrb[16].mxu1 }
 0x204   : > { %894 = vst.msk [vmem:[%s1378_s26] sm:$0xf] %vm893_vm4, %v1041_v39  ;;  %v1042_v30 = vpack.c.bf16 %v814_v40, %v814_v40  ;;  %v1388_v43 = vadd.f32 %v1081_v42, %v1315_v26  ;;  %v654_v44 = vpop.f32.mrb[17].mxu1 }
 0x205   : > { %897 = vst.msk [vmem:[%s1378_s26 + $0xc] sm:$0xf] %vm893_vm4, %v1044_v41  ;;  %v1393_v33 = vadd.f32 %v1315_v26, %v654_v44  ;;  %v1082_v45 = vpop.f32.mrb[18].mxu1 }
 0x206   : > { %895 = vst.msk [vmem:[%s1378_s26 + $0x4] sm:$0xf] %vm893_vm4, %v1042_v30  ;;  %v695_v36 = vmul.f32 %v1388_v43, %v1388_v43  ;;  %v1400_v46 = vadd.f32 %v1082_v45, %v1315_v26  ;;  %v657_v47 = vpop.f32.mrb[19].mxu1 }
 0x207   : > { %v693_v48 = vmul.f32 %v1393_v33, %v1393_v33  ;;  %v1405_v49 = vadd.f32 %v1315_v26, %v657_v47 }
 0x208   : > { %v711_v50 = vmul.f32 %v695_v36, %v1388_v43  ;;  %v696_v51 = vmul.f32 %v1400_v46, %v1400_v46 }
 0x209   : > { %v709_v52 = vmul.f32 %v693_v48, %v1393_v33  ;;  %v694_v53 = vmul.f32 %v1405_v49, %v1405_v49 }
 0x20a   : > { %v1162_v54 = vpop.eup %1161  ;;  %v727_v55 = vmul.f32 0.044715, %v711_v50  ;;  %v712_v57 = vmul.f32 %v696_v51, %v1400_v46 }
 0x20b   : > { %v1164_v59 = vpop.eup %1163  ;;  %v787_v60 = vadd.f32 1.0, %v1162_v54  ;;  %v725_v62 = vmul.f32 0.044715, %v709_v52  ;;  %v710_v63 = vmul.f32 %v694_v53, %v1405_v49  ;;  %v1085_v1 = vpop.f32.mrb[20].mxu1 }
 0x20c   : > { %v1166_v2 = vpop.eup %1165  ;;  %v785_v3 = vadd.f32 1.0, %v1164_v59  ;;  %v743_v4 = vadd.f32 %v727_v55, %v1388_v43  ;;  %v728_v5 = vmul.f32 0.044715, %v712_v57  ;;  %v1417_v6 = vadd.f32 %v1085_v1, %v1315_v26  ;;  %v670_v7 = vpop.f32.mrb[21].mxu1 }
 0x20d   : > { %v1168_v8 = vpop.eup %1167  ;;  %v803_v9 = vmul.f32 0.5, %v787_v60  ;;  %v788_v10 = vadd.f32 1.0, %v1166_v2  ;;  %v741_v11 = vadd.f32 %v725_v62, %v1393_v33  ;;  %v726_v12 = vmul.f32 0.044715, %v710_v63  ;;  %v1086_v13 = vpop.f32.mrb[22].mxu1 }
 0x20e   : > { %v801_v14 = vmul.f32 0.5, %v785_v3  ;;  %v786_v15 = vadd.f32 1.0, %v1168_v8  ;;  %v759_v16 = vmul.f32 0.7978846, %v743_v4  ;;  %v744_v17 = vadd.f32 %v728_v5, %v1400_v46  ;;  %v673_v18 = vpop.f32.mrb[23].mxu1 }
 0x20f   : > { %v819_v19 = vmul.f32 %v803_v9, %v1346_v56  ;;  %v804_v20 = vmul.f32 0.5, %v788_v10  ;;  %v757_v21 = vmul.f32 0.7978846, %v741_v11  ;;  %v742_v22 = vadd.f32 %v726_v12, %v1405_v49 }
 0x210   : > { %v817_v23 = vmul.f32 %v801_v14, %v1349_v58  ;;  %v802_v24 = vmul.f32 0.5, %v786_v15  ;;  %1169 = vtanh.f32 %v759_v16  ;;  %v760_v25 = vmul.f32 0.7978846, %v744_v17 }
 0x211   : > { %v1047_v27 = vpack.c.bf16 %v819_v19, %v819_v19  ;;  %v820_v29 = vmul.f32 %v804_v20, %v1354_v61  ;;  %1171 = vtanh.f32 %v757_v21  ;;  %v758_v31 = vmul.f32 0.7978846, %v742_v22 }
 0x212   : > { %v1045_v32 = vpack.c.bf16 %v817_v23, %v817_v23  ;;  %v818_v56 = vmul.f32 %v802_v24, %v1359_v0  ;;  %1173 = vtanh.f32 %v760_v25  ;;  %v699_v34 = vmul.f32 %v1417_v6, %v1417_v6 }
 0x213   : > { %900 = vst.msk [vmem:[%s1378_s26 + $0x18] sm:$0xf] %vm893_vm4, %v1047_v27  ;;  %v1048_v58 = vpack.c.bf16 %v820_v29, %v820_v29  ;;  %1175 = vtanh.f32 %v758_v31  ;;  %v1431_v35 = vadd.f32 %v1315_v26, %v670_v7  ;;  %v1434_v61 = vadd.f32 %v1086_v13, %v1315_v26 }
 0x214   : > { %898 = vst.msk [vmem:[%s1378_s26 + $0x10] sm:$0xf] %vm893_vm4, %v1045_v32  ;;  %v1046_v37 = vpack.c.bf16 %v818_v56, %v818_v56  ;;  %v715_v28 = vmul.f32 %v699_v34, %v1417_v6  ;;  %v1440_v0 = vadd.f32 %v1315_v26, %v673_v18 }
 0x215   : > { %901 = vst.msk [vmem:[%s1378_s26 + $0x1c] sm:$0xf] %vm893_vm4, %v1048_v58  ;;  %v697_v38 = vmul.f32 %v1431_v35, %v1431_v35  ;;  %v700_v39 = vmul.f32 %v1434_v61, %v1434_v61 }
 0x216   : > { %899 = vst.msk [vmem:[%s1378_s26 + $0x14] sm:$0xf] %vm893_vm4, %v1046_v37  ;;  %v731_v40 = vmul.f32 0.044715, %v715_v28  ;;  %v698_v41 = vmul.f32 %v1440_v0, %v1440_v0 }
 0x217   : > { %v713_v42 = vmul.f32 %v697_v38, %v1431_v35  ;;  %v716_v30 = vmul.f32 %v700_v39, %v1434_v61 }
 0x218   : > { %v747_v26 = vadd.f32 %v731_v40, %v1417_v6  ;;  %v714_v44 = vmul.f32 %v698_v41, %v1440_v0 }
 0x219   : > { %v729_v45 = vmul.f32 0.044715, %v713_v42  ;;  %v732_v36 = vmul.f32 0.044715, %v716_v30 }
 0x21a   : > { %v1170_v47 = vpop.eup %1169  ;;  %v763_v48 = vmul.f32 0.7978846, %v747_v26  ;;  %v730_v50 = vmul.f32 0.044715, %v714_v44 }
 0x21b   : > { %v1172_v51 = vpop.eup %1171  ;;  %v791_v52 = vadd.f32 1.0, %v1170_v47  ;;  %v745_v53 = vadd.f32 %v729_v45, %v1431_v35  ;;  %v748_v54 = vadd.f32 %v732_v36, %v1434_v61 }
 0x21c   : > { %v1174_v55 = vpop.eup %1173  ;;  %v789_v57 = vadd.f32 1.0, %v1172_v51  ;;  %1177 = vtanh.f32 %v763_v48  ;;  %v746_v59 = vadd.f32 %v730_v50, %v1440_v0 }
 0x21d   : > { %v1176_v60 = vpop.eup %1175  ;;  %v807_v62 = vmul.f32 0.5, %v791_v52  ;;  %v792_v63 = vadd.f32 1.0, %v1174_v55  ;;  %v761_v1 = vmul.f32 0.7978846, %v745_v53  ;;  %v764_v2 = vmul.f32 0.7978846, %v748_v54 }
 0x21e   : > { %v805_v3 = vmul.f32 0.5, %v789_v57  ;;  %v790_v4 = vadd.f32 1.0, %v1176_v60  ;;  %v762_v5 = vmul.f32 0.7978846, %v746_v59 }
 0x21f   : > { %v823_v7 = vmul.f32 %v807_v62, %v1388_v43  ;;  %v808_v8 = vmul.f32 0.5, %v792_v63  ;;  %1179 = vtanh.f32 %v761_v1 }
 0x220   : > { %v821_v9 = vmul.f32 %v805_v3, %v1393_v33  ;;  %v806_v10 = vmul.f32 0.5, %v790_v4  ;;  %1181 = vtanh.f32 %v764_v2 }
 0x221   : > { %v1051_v11 = vpack.c.bf16 %v823_v7, %v823_v7  ;;  %v824_v12 = vmul.f32 %v808_v8, %v1400_v46  ;;  %1183 = vtanh.f32 %v762_v5 }
 0x222   : > { %v1049_v13 = vpack.c.bf16 %v821_v9, %v821_v9  ;;  %v822_v14 = vmul.f32 %v806_v10, %v1405_v49 }
 0x223   : > { %904 = vst.msk [vmem:[%s1378_s26 + $0x28] sm:$0xf] %vm893_vm4, %v1051_v11  ;;  %v1052_v15 = vpack.c.bf16 %v824_v12, %v824_v12 }
 0x224   : > { %902 = vst.msk [vmem:[%s1378_s26 + $0x20] sm:$0xf] %vm893_vm4, %v1049_v13  ;;  %v1050_v43 = vpack.c.bf16 %v822_v14, %v822_v14 }
 0x225   : > { %905 = vst.msk [vmem:[%s1378_s26 + $0x2c] sm:$0xf] %vm893_vm4, %v1052_v15 }
 0x226   : > { %v1178_v16 = vpop.eup %1177  ;;  %903 = vst.msk [vmem:[%s1378_s26 + $0x24] sm:$0xf] %vm893_vm4, %v1050_v43 }
 0x227   : > { %v795_v33 = vadd.f32 1.0, %v1178_v16 }
 0x229   : > { %v1180_v17 = vpop.eup %1179  ;;  %v811_v18 = vmul.f32 0.5, %v795_v33 }
 0x22a   : > { %v1182_v46 = vpop.eup %1181  ;;  %v793_v19 = vadd.f32 1.0, %v1180_v17 }
 0x22b   : > { %v1184_v20 = vpop.eup %1183  ;;  %v827_v49 = vmul.f32 %v811_v18, %v1417_v6  ;;  %v796_v21 = vadd.f32 1.0, %v1182_v46 }
 0x22c   : > { %v809_v22 = vmul.f32 0.5, %v793_v19  ;;  %v794_v23 = vadd.f32 1.0, %v1184_v20 }
 0x22d   : > { %v1055_v24 = vpack.c.bf16 %v827_v49, %v827_v49  ;;  %v812_v25 = vmul.f32 0.5, %v796_v21 }
 0x22e   : > { %v825_v27 = vmul.f32 %v809_v22, %v1431_v35  ;;  %v810_v29 = vmul.f32 0.5, %v794_v23 }
 0x22f   : > { %908 = vst.msk [vmem:[%s1378_s26 + $0x38] sm:$0xf] %vm893_vm4, %v1055_v24  ;;  %v828_v31 = vmul.f32 %v812_v25, %v1434_v61 }
 0x230   : > { %v1053_v32 = vpack.c.bf16 %v825_v27, %v825_v27  ;;  %v826_v56 = vmul.f32 %v810_v29, %v1440_v0 }
 0x231   : > { %v1056_v34 = vpack.c.bf16 %v828_v31, %v828_v31 }
 0x232   : > { %906 = vst.msk [vmem:[%s1378_s26 + $0x30] sm:$0xf] %vm893_vm4, %v1053_v32  ;;  %v1054_v6 = vpack.c.bf16 %v826_v56, %v826_v56 }
 0x233   : > { %909 = vst.msk [vmem:[%s1378_s26 + $0x3c] sm:$0xf] %vm893_vm4, %v1056_v34 }
 0x234   : > { %907 = vst.msk [vmem:[%s1378_s26 + $0x34] sm:$0xf] %vm893_vm4, %v1054_v6 }
 0x235 PF: > { %s15_s18 = sadd.s32 1, %s1191_s18  }
 0x236   : > { %p12_p4 = scmp.ge.s32.totalorder %s15_s18, 4  }
 0x238   :  { %14 = sbr.rel (!%p12_p4) target bundleno = 1 (0x1), region = 70 }

// kernel: _forward_impl.5
= control target key start
LH: loop header
LB: loop body
LE: loop exit
PB: predicated region body
PF: predicated region fallthrough
CT: control target
= control target key end

     0   :  { %vm287_vm0 = vcmask 519168   ;;  %s556_s1 = inlined_call_operand.vmem [shape: bf16[128,64], index: 1, kind: input, shape index: {}]   ;;  %s557_s0 = inlined_call_operand.vmem [shape: bf16[64,128], index: 0, kind: input, shape index: {}]   ;;  %s558_s2 = inlined_call_operand.vmem [shape: f32[1,64], index: 2, kind: input, shape index: {}]   ;;  %s559_s3 = inlined_call_operand.vmem [shape: bf16[64,64], index: 3, kind: output, shape index: {}]  }
   0x1   :  { %v381_v0 = vld [vmem:[%s556_s1] sm:$0xff]   ;;  %v382_v1 = vld [vmem:[%s556_s1 + $0x8] sm:$0xff]   ;;  %v383_v2 = vld [vmem:[%s556_s1 + $0x10] sm:$0xff]  }
   0x2   :  { %341 = vmatprep.subr.bf16.mxu0 %v381_v0  ;;  %365 = vmatprep.subr.bf16.mxu1 %v381_v0  ;;  %v384_v3 = vld [vmem:[%s556_s1 + $0x18] sm:$0xff]   ;;  %v389_v4 = vld [vmem:[%s557_s0] sm:$0xff]   ;;  %v390_v5 = vld [vmem:[%s557_s0 + $0x10] sm:$0xff]  }
   0x3   :  { %342 = vmatpush3.bf16.msra.mxu0 %v381_v0  ;;  %373 = vmatpush3.bf16.msra.mxu1 %v381_v0  ;;  %v385_v6 = vld [vmem:[%s556_s1 + $0x20] sm:$0xff]   ;;  %v386_v7 = vld [vmem:[%s556_s1 + $0x28] sm:$0xff]   ;;  %v387_v8 = vld [vmem:[%s556_s1 + $0x30] sm:$0xff]  }
   0x4   :  { %343 = vmatprep.subr.bf16.mxu0 %v382_v1  ;;  %366 = vmatprep.subr.bf16.mxu1 %v382_v1  ;;  %v388_v9 = vld [vmem:[%s556_s1 + $0x38] sm:$0xff]   ;;  %v391_v10 = vld [vmem:[%s557_s0 + $0x8] sm:$0xff]   ;;  %v300_v12 = vld [vmem:[%s558_s2] ss:$0 sm:$0xff] }
   0x5   :  { %357 = vmatprep.mubr.bf16.mxu0 %v389_v4  ;;  %361 = vmatprep.mubr.bf16.mxu1 %v390_v5  ;;  %v392_v11 = vld [vmem:[%s557_s0 + $0x18] sm:$0xff]  }
   0x7   :  { %344 = vmatpush3.bf16.msra.mxu0 %v382_v1  ;;  %374 = vmatpush3.bf16.msra.mxu1 %v382_v1 }
   0x8   :  { %345 = vmatprep.subr.bf16.mxu0 %v383_v2  ;;  %367 = vmatprep.subr.bf16.mxu1 %v383_v2 }
   0xb   :  { %346 = vmatpush3.bf16.msra.mxu0 %v383_v2  ;;  %375 = vmatpush3.bf16.msra.mxu1 %v383_v2 }
   0xc   :  { %347 = vmatprep.subr.bf16.mxu0 %v384_v3  ;;  %368 = vmatprep.subr.bf16.mxu1 %v384_v3 }
   0xf   :  { %348 = vmatpush3.bf16.msra.mxu0 %v384_v3  ;;  %376 = vmatpush3.bf16.msra.mxu1 %v384_v3 }
  0x10   :  { %349 = vmatprep.subr.bf16.mxu0 %v385_v6  ;;  %369 = vmatprep.subr.bf16.mxu1 %v385_v6 }
  0x13   :  { %350 = vmatpush3.bf16.msra.mxu0 %v385_v6  ;;  %377 = vmatpush3.bf16.msra.mxu1 %v385_v6 }
  0x14   :  { %351 = vmatprep.subr.bf16.mxu0 %v386_v7  ;;  %370 = vmatprep.subr.bf16.mxu1 %v386_v7 }
  0x17   :  { %352 = vmatpush3.bf16.msra.mxu0 %v386_v7  ;;  %378 = vmatpush3.bf16.msra.mxu1 %v386_v7 }
  0x18   :  { %353 = vmatprep.subr.bf16.mxu0 %v387_v8  ;;  %371 = vmatprep.subr.bf16.mxu1 %v387_v8 }
  0x1b   :  { %354 = vmatpush3.bf16.msra.mxu0 %v387_v8  ;;  %379 = vmatpush3.bf16.msra.mxu1 %v387_v8 }
  0x1c   :  { %355 = vmatprep.subr.bf16.mxu0 %v388_v9  ;;  %372 = vmatprep.subr.bf16.mxu1 %v388_v9 }
  0x1f   :  { %356 = vmatpush3.bf16.msra.mxu0 %v388_v9  ;;  %380 = vmatpush3.bf16.msra.mxu1 %v388_v9 }
  0x22   :  { %358 = vmatmul.mubr.bf16.vlgmr.msra.gmra.mrb[0].mxu0 %v391_v10  ;;  %362 = vmatmul.mubr.bf16.vlgmr.msra.gmra.mrb[0].mxu1 %v392_v11 }
  0xf5   :  { %v359_v13 = vpop.f32.mrb[0].mxu0  ;;  %v363_v14 = vpop.f32.mrb[0].mxu1 }
  0xf6   :  { %v468_v15 = vadd.f32 %v359_v13, %v300_v12  ;;  %v470_v16 = vadd.f32 %v363_v14, %v300_v12  ;;  %v152_v17 = vpop.f32.mrb[1].mxu0  ;;  %v168_v18 = vpop.f32.mrb[1].mxu1 }
  0xf7   :  { %v472_v19 = vadd.f32 %v300_v12, %v152_v17  ;;  %v474_v20 = vadd.f32 %v300_v12, %v168_v18  ;;  %v360_v21 = vpop.f32.mrb[2].mxu0  ;;  %v364_v22 = vpop.f32.mrb[2].mxu1 }
  0xf8   :  { %v185_v23 = vmul.f32 %v468_v15, %v468_v15  ;;  %v189_v24 = vmul.f32 %v470_v16, %v470_v16  ;;  %v480_v25 = vadd.f32 %v360_v21, %v300_v12  ;;  %v482_v26 = vadd.f32 %v364_v22, %v300_v12  ;;  %v155_v27 = vpop.f32.mrb[3].mxu0  ;;  %v171_v28 = vpop.f32.mrb[3].mxu1 }
  0xf9   :  { %v183_v29 = vmul.f32 %v472_v19, %v472_v19  ;;  %v187_v30 = vmul.f32 %v474_v20, %v474_v20  ;;  %v488_v31 = vadd.f32 %v300_v12, %v155_v27  ;;  %v490_v32 = vadd.f32 %v300_v12, %v171_v28 }
  0xfa   :  { %v193_v33 = vmul.f32 %v185_v23, %v468_v15  ;;  %v197_v34 = vmul.f32 %v189_v24, %v470_v16  ;;  %v186_v35 = vmul.f32 %v480_v25, %v480_v25  ;;  %v190_v36 = vmul.f32 %v482_v26, %v482_v26 }
  0xfb   :  { %v191_v37 = vmul.f32 %v183_v29, %v472_v19  ;;  %v195_v38 = vmul.f32 %v187_v30, %v474_v20  ;;  %v184_v39 = vmul.f32 %v488_v31, %v488_v31  ;;  %v188_v40 = vmul.f32 %v490_v32, %v490_v32 }
  0xfc   :  { %v201_v41 = vmul.f32 0.044715, %v193_v33  ;;  %v205_v42 = vmul.f32 0.044715, %v197_v34  ;;  %v194_v43 = vmul.f32 %v186_v35, %v480_v25  ;;  %v198_v44 = vmul.f32 %v190_v36, %v482_v26 }
  0xfd   :  { %v199_v45 = vmul.f32 0.044715, %v191_v37  ;;  %v203_v46 = vmul.f32 0.044715, %v195_v38  ;;  %v192_v47 = vmul.f32 %v184_v39, %v488_v31  ;;  %v196_v48 = vmul.f32 %v188_v40, %v490_v32 }
  0xfe   :  { %v209_v49 = vadd.f32 %v201_v41, %v468_v15  ;;  %v213_v50 = vadd.f32 %v205_v42, %v470_v16  ;;  %v202_v51 = vmul.f32 0.044715, %v194_v43  ;;  %v206_v52 = vmul.f32 0.044715, %v198_v44 }
  0xff   :  { %v207_v53 = vadd.f32 %v199_v45, %v472_v19  ;;  %v211_v54 = vadd.f32 %v203_v46, %v474_v20  ;;  %v200_v55 = vmul.f32 0.044715, %v192_v47  ;;  %v204_v56 = vmul.f32 0.044715, %v196_v48 }
 0x100   :  { %v217_v57 = vmul.f32 0.7978846, %v209_v49  ;;  %v221_v58 = vmul.f32 0.7978846, %v213_v50  ;;  %v210_v59 = vadd.f32 %v202_v51, %v480_v25  ;;  %v214_v60 = vadd.f32 %v206_v52, %v482_v26 }
 0x101   :  { %v215_v61 = vmul.f32 0.7978846, %v207_v53  ;;  %v219_v62 = vmul.f32 0.7978846, %v211_v54  ;;  %v208_v63 = vadd.f32 %v200_v55, %v488_v31  ;;  %v212_v0 = vadd.f32 %v204_v56, %v490_v32 }
 0x102   :  { %393 = vtanh.f32 %v217_v57  ;;  %v218_v1 = vmul.f32 0.7978846, %v210_v59  ;;  %v222_v2 = vmul.f32 0.7978846, %v214_v60 }
 0x103   :  { %395 = vtanh.f32 %v221_v58  ;;  %v216_v3 = vmul.f32 0.7978846, %v208_v63  ;;  %v220_v4 = vmul.f32 0.7978846, %v212_v0 }
 0x104   :  { %397 = vtanh.f32 %v215_v61 }
 0x105   :  { %399 = vtanh.f32 %v219_v62 }
 0x106   :  { %401 = vtanh.f32 %v218_v1 }
 0x107   :  { %403 = vtanh.f32 %v222_v2 }
 0x108   :  { %405 = vtanh.f32 %v216_v3 }
 0x109   :  { %407 = vtanh.f32 %v220_v4 }
 0x10c   :  { %v394_v5 = vpop.eup %393 }
 0x10d   :  { %v396_v6 = vpop.eup %395  ;;  %v233_v7 = vadd.f32 1.0, %v394_v5 }
 0x10e   :  { %v398_v8 = vpop.eup %397  ;;  %v237_v9 = vadd.f32 1.0, %v396_v6 }
 0x10f   :  { %v400_v10 = vpop.eup %399  ;;  %v241_v11 = vmul.f32 0.5, %v233_v7  ;;  %v231_v12 = vadd.f32 1.0, %v398_v8 }
 0x110   :  { %v402_v13 = vpop.eup %401  ;;  %v245_v14 = vmul.f32 0.5, %v237_v9  ;;  %v235_v17 = vadd.f32 1.0, %v400_v10 }
 0x111   :  { %v404_v18 = vpop.eup %403  ;;  %v249_v21 = vmul.f32 %v241_v11, %v468_v15  ;;  %v239_v22 = vmul.f32 0.5, %v231_v12  ;;  %v234_v23 = vadd.f32 1.0, %v402_v13 }
 0x112   :  { %v406_v24 = vpop.eup %405  ;;  %v253_v27 = vmul.f32 %v245_v14, %v470_v16  ;;  %v243_v28 = vmul.f32 0.5, %v235_v17  ;;  %v238_v29 = vadd.f32 1.0, %v404_v18 }
 0x113   :  { %v408_v30 = vpop.eup %407  ;;  %v323_v33 = vpack.c.bf16 %v249_v21, %v249_v21  ;;  %v247_v34 = vmul.f32 %v239_v22, %v472_v19  ;;  %v242_v35 = vmul.f32 0.5, %v234_v23  ;;  %v232_v36 = vadd.f32 1.0, %v406_v24 }
 0x114   :  { %v327_v37 = vpack.c.bf16 %v253_v27, %v253_v27  ;;  %v251_v38 = vmul.f32 %v243_v28, %v474_v20  ;;  %v246_v39 = vmul.f32 0.5, %v238_v29  ;;  %v236_v40 = vadd.f32 1.0, %v408_v30 }
 0x115   :  { %290 = vst.msk [vmem:[%s559_s3 + $0x8] sm:$0xf] %vm287_vm0, %v323_v33  ;;  %v321_v15 = vpack.c.bf16 %v247_v34, %v247_v34  ;;  %v250_v16 = vmul.f32 %v242_v35, %v480_v25  ;;  %v240_v41 = vmul.f32 0.5, %v232_v36 }
 0x116   :  { %294 = vst.msk [vmem:[%s559_s3 + $0x18] sm:$0xf] %vm287_vm0, %v327_v37  ;;  %v325_v19 = vpack.c.bf16 %v251_v38, %v251_v38  ;;  %v254_v42 = vmul.f32 %v246_v39, %v482_v26  ;;  %v244_v20 = vmul.f32 0.5, %v236_v40 }
 0x117   :  { %288 = vst.msk [vmem:[%s559_s3] sm:$0xf] %vm287_vm0, %v321_v15  ;;  %v324_v43 = vpack.c.bf16 %v250_v16, %v250_v16  ;;  %v248_v44 = vmul.f32 %v240_v41, %v488_v31 }
 0x118   :  { %292 = vst.msk [vmem:[%s559_s3 + $0x10] sm:$0xf] %vm287_vm0, %v325_v19  ;;  %v328_v25 = vpack.c.bf16 %v254_v42, %v254_v42  ;;  %v252_v45 = vmul.f32 %v244_v20, %v490_v32 }
 0x119   :  { %291 = vst.msk [vmem:[%s559_s3 + $0xc] sm:$0xf] %vm287_vm0, %v324_v43  ;;  %v322_v26 = vpack.c.bf16 %v248_v44, %v248_v44 }
 0x11a   :  { %295 = vst.msk [vmem:[%s559_s3 + $0x1c] sm:$0xf] %vm287_vm0, %v328_v25  ;;  %v326_v31 = vpack.c.bf16 %v252_v45, %v252_v45 }
 0x11b   :  { %289 = vst.msk [vmem:[%s559_s3 + $0x4] sm:$0xf] %vm287_vm0, %v322_v26 }
 0x11c   :  { %293 = vst.msk [vmem:[%s559_s3 + $0x14] sm:$0xf] %vm287_vm0, %v326_v31 }

// kernel: _forward_impl.7
= control target key start
LH: loop header
LB: loop body
LE: loop exit
PB: predicated region body
PF: predicated region fallthrough
CT: control target
= control target key end

     0   :  { %s125_s0 = inlined_call_operand.vmem [shape: bf16[16,128], index: 0, kind: input, shape index: {}]   ;;  %s126_s1 = inlined_call_operand.vmem [shape: bf16[16,128], index: 1, kind: input, shape index: {}]   ;;  %s127_s2 = inlined_call_operand.vmem [shape: f32[8,128], index: 2, kind: output, shape index: {}]  }
   0x1   :  { %v93_v0 = vld [vmem:[%s125_s0] sm:$0xff]  }
   0x2   :  { %v97_v1 = vld [vmem:[%s126_s1] sm:$0xff]   ;;  %v94_v2 = vunpack.c.l.bf16 %v93_v0  ;;  %v95_v3 = vunpack.c.h.bf16 %v93_v0 }
   0x3   :  { %v98_v4 = vunpack.c.l.bf16 %v97_v1  ;;  %v99_v5 = vunpack.c.h.bf16 %v97_v1 }
   0x5   :  { %v68_v6 = vsub.f32 %v94_v2, %v98_v4  ;;  %v69_v7 = vsub.f32 %v95_v3, %v99_v5 }
   0x7   :  { %v70_v8 = vand.u32 2147483647, %v68_v6  ;;  %v71_v9 = vand.u32 2147483647, %v69_v7 }
   0x9   :  { %v73_v10 = vadd.f32 %v71_v9, %v70_v8 }
   0xb   :  { %75 = vst [vmem:[%s127_s2] sm:$0xff] %v73_v10 }

// kernel: _forward_impl.6
= control target key start
LH: loop header
LB: loop body
LE: loop exit
PB: predicated region body
PF: predicated region fallthrough
CT: control target
= control target key end

     0   :  { %s163_s0 = inlined_call_operand.vmem [shape: f32[48,128], index: 0, kind: input, shape index: {}]   ;;  %s164_s1 = inlined_call_operand.vmem [shape: f32[48,128], index: 1, kind: input, shape index: {}]   ;;  %s165_s2 = inlined_call_operand.vmem [shape: f32[8,128], index: 2, kind: output, shape index: {}]  }
   0x1   :  { %v60_v0 = vld [vmem:[%s163_s0] sm:$0xff]  ;;  %v61_v1 = vld [vmem:[%s163_s0 + $0x8] sm:$0xff]  ;;  %v62_v2 = vld [vmem:[%s163_s0 + $0x10] sm:$0xff] }
   0x2   :  { %v63_v3 = vld [vmem:[%s163_s0 + $0x18] sm:$0xff]  ;;  %v64_v4 = vld [vmem:[%s163_s0 + $0x20] sm:$0xff]  ;;  %v67_v6 = vld [vmem:[%s164_s1 + $0x8] sm:$0xff] }
   0x3   :  { %v66_v5 = vld [vmem:[%s164_s1] sm:$0xff]  ;;  %v68_v7 = vld [vmem:[%s164_s1 + $0x10] sm:$0xff]  ;;  %v69_v8 = vld [vmem:[%s164_s1 + $0x18] sm:$0xff]  ;;  %v73_v11 = vsub.f32 %v61_v1, %v67_v6 }
   0x4   :  { %v70_v9 = vld [vmem:[%s164_s1 + $0x20] sm:$0xff]  ;;  %v72_v10 = vsub.f32 %v60_v0, %v66_v5  ;;  %v74_v12 = vsub.f32 %v62_v2, %v68_v7  ;;  %v65_v13 = vld [vmem:[%s163_s0 + $0x28] sm:$0xff]  ;;  %v75_v15 = vsub.f32 %v63_v3, %v69_v8 }
   0x5   :  { %v71_v14 = vld [vmem:[%s164_s1 + $0x28] sm:$0xff]  ;;  %v76_v16 = vsub.f32 %v64_v4, %v70_v9  ;;  %v79_v18 = vmul.f32 %v73_v11, %v73_v11 }
   0x6   :  { %v78_v17 = vmul.f32 %v72_v10, %v72_v10  ;;  %v80_v19 = vmul.f32 %v74_v12, %v74_v12  ;;  %v77_v20 = vsub.f32 %v65_v13, %v71_v14  ;;  %v81_v21 = vmul.f32 %v75_v15, %v75_v15 }
   0x7   :  { %v82_v23 = vmul.f32 %v76_v16, %v76_v16 }
   0x8   :  { %v85_v22 = vadd.f32 %v79_v18, %v78_v17  ;;  %v83_v25 = vmul.f32 %v77_v20, %v77_v20 }
   0xa   :  { %v86_v24 = vadd.f32 %v85_v22, %v80_v19 }
   0xc   :  { %v87_v26 = vadd.f32 %v86_v24, %v81_v21 }
   0xe   :  { %v88_v27 = vadd.f32 %v87_v26, %v82_v23 }
  0x10   :  { %v89_v28 = vadd.f32 %v88_v27, %v83_v25 }
  0x12   :  { %91 = vst [vmem:[%s165_s2] sm:$0xff] %v89_v28 }

</bundles_post_ra>
